<compile_context>
chip_gen: v7x
topology: tpu7x:2x2x1
jax: 0.10.0
libtpu: 0.0.40
codegen_flags: <defaults>
</compile_context>

<pallas_src>
import functools

import jax
import jax.numpy as jnp
from jax.experimental import pallas as pl
from jax.experimental.pallas import tpu as pltpu


_LANE = 128                 # vreg lane width: feature dims zero-padded to this
_MIB = 1024 * 1024


def _round_up(n, m):
    return ((n + m - 1) // m) * m


# ---- pipeline_mode / Buffered(1) support probe (single-buffer resident weights)
try:
    pl.BlockSpec((8, 128), lambda i: (0, 0), pipeline_mode=pl.Buffered(1))
    _HAS_PIPELINE_MODE = True
    _WEIGHT_BUFFERS = 1
except Exception:  # older Pallas without pipeline_mode: fall back to default
    _HAS_PIPELINE_MODE = False
    _WEIGHT_BUFFERS = 2


def _resident_spec(shape):
    """BlockSpec for blocks whose index_map is constant over the whole grid
    (weights / biases).  Single-buffered when supported -> halves their VMEM."""
    if _HAS_PIPELINE_MODE:
        return pl.BlockSpec(shape, lambda i: (0, 0), pipeline_mode=pl.Buffered(1))
    return pl.BlockSpec(shape, lambda i: (0, 0))


def _tpu_generation():
    try:
        kind = jax.devices()[0].device_kind.lower()
    except Exception:
        return "unknown"
    if "v5" in kind:
        return "v5e"
    if "v6" in kind:
        return "v6e"
    if "7" in kind:
        return "v7x"
    return "unknown"


def _gen_params():
    """(generation, max batch-tile rows, physical VMEM bytes, TCs per chip)."""
    table = {
        # max_tm, physical VMEM, TensorCores per chip
        "v5e": (256, 128 * _MIB, 1),
        "v6e": (512, 128 * _MIB, 1),   # 256x256 MXU: bigger tiles amortize step overhead
        "v7x": (256, 64 * _MIB, 2),    # half the VMEM, 2 TCs share the grid
        "unknown": (256, 64 * _MIB, 1),
    }
    gen = _tpu_generation()
    max_tm, vmem_phys, n_cores = table[gen]
    try:  # prefer the runtime-reported VMEM capacity when available
        vmem_phys = int(pltpu.get_tpu_info().vmem_capacity_bytes)
    except Exception:
        pass
    return gen, max_tm, vmem_phys, n_cores


def _sublane_pack(dtype):
    """Rows per sublane group: 8 for 4-byte, 16 for bf16, 32 for 1-byte dtypes."""
    return max(8, 32 // jnp.dtype(dtype).itemsize)


def _fused_ffc_kernel(*refs, num_layers, tanh_flags, compute_dtype):
    """One batch tile through the whole FC chain.

    refs = (x_ref, wt0_ref, b0_ref, wt1_ref, b1_ref, ..., o_ref)
    wt_i is the pre-transposed, lane-padded weight (K_pad, N_pad) in
    `compute_dtype`; b_i is (1, N_pad) f32.  MXU matmuls accumulate in f32;
    bias add and tanh run in f32 on the VPU/EUP; intermediates stay in
    vregs/VMEM (never round-trip HBM).  The Python loop is intentionally
    fully unrolled so the LLO scheduler sees all MXU/EUP/VPU work.
    """
    x_ref = refs[0]
    o_ref = refs[-1]
    h = x_ref[...]                                     # already compute_dtype
    for i in range(num_layers):
        wt = refs[1 + 2 * i][...]
        b = refs[2 + 2 * i][...]
        lhs = h if h.dtype == compute_dtype else h.astype(compute_dtype)
        acc = jnp.dot(lhs, wt, preferred_element_type=jnp.float32)
        acc = acc + b                                  # (1, N_pad) broadcast, f32
        if tanh_flags[i]:
            acc = jnp.tanh(acc)                        # EUP transcendental, f32
        h = acc
    o_ref[...] = h if h.dtype == o_ref.dtype else h.astype(o_ref.dtype)


class BaseFFC:
    """JAX/Pallas mirror of kernet's `_baseFFC` forward semantics.

    Numeric contract: with compute_dtype=bfloat16, the input and weights are
    quantized to bf16 before the MXU (f32 accumulation); expect ~1e-2 level
    differences vs f32.  bf16 is recommended on v5e/v6e/v7x (native MXU dtype).
    """

    def __init__(self, compute_dtype=jnp.float32, out_dtype=None):
        self._layer_counter = 0
        self._layers = []                 # padded params + static config
        self._compute_dtype = jnp.dtype(compute_dtype)
        self._out_dtype = None if out_dtype is None else jnp.dtype(out_dtype)
        self._fwd_cache = {}              # upto (exclusive) -> jitted forward

    def add_layer(self, w, b, apply_tanh=False):
        """Register a fully-connected layer (first added = closest to input).

        w: (out_features, in_features) PyTorch Linear layout; b: (out_features,).
        The weight is transposed and zero-padded to lane multiples ONCE here.
        """
        n_out, n_in = w.shape
        k_pad = _round_up(n_in, _LANE)
        n_pad = _round_up(n_out, _LANE)
        wt = jnp.zeros((k_pad, n_pad), self._compute_dtype)
        wt = wt.at[:n_in, :n_out].set(jnp.asarray(w, self._compute_dtype).T)
        bb = jnp.zeros((1, n_pad), jnp.float32)
        bb = bb.at[0, :n_out].set(jnp.asarray(b, jnp.float32))
        self._layers.append(dict(wt=wt, b=bb, n_in=n_in, n_out=n_out,
                                 k_pad=k_pad, n_pad=n_pad,
                                 tanh=bool(apply_tanh)))
        self._layer_counter += 1
        self._fwd_cache.clear()

    def __call__(self, x, upto=None, update_X=False):
        return self.forward(x, upto=upto, update_X=update_X)

    def forward(self, x, upto=None, update_X=False):
        # update_X only affects _kn layers; plain FC layers ignore it, matching
        # the reference's `update_X = False` branch for non-_kn layers.
        # TODO(synk): _kn / knFC update_X recomputation has no Pallas equivalent
        # here (kernel-network layers are out of scope for this container use).
        if upto is not None:
            assert 0 <= upto <= self._layer_counter
            # Clamp instead of indexing past the layer list.
            upto = min(upto + 1, self._layer_counter)
        else:
            upto = self._layer_counter
        if upto == 0:
            return x
        fwd = self._get_forward(upto)
        flat = [x]
        for layer in self._layers[:upto]:
            flat.append(layer["wt"])
            flat.append(layer["b"])
        return fwd(*flat)

    # ------------------------------------------------------------------ #

    def _get_forward(self, upto):
        if upto in self._fwd_cache:
            return self._fwd_cache[upto]

        layers = self._layers[:upto]
        for prev, nxt in zip(layers[:-1], layers[1:]):
            assert nxt["n_in"] == prev["n_out"], "layer dims must chain"
        tanh_flags = tuple(l["tanh"] for l in layers)
        k0, k0_pad = layers[0]["n_in"], layers[0]["k_pad"]
        n_out, n_out_pad = layers[-1]["n_out"], layers[-1]["n_pad"]
        compute_dtype = self._compute_dtype
        c_item = compute_dtype.itemsize
        out_dtype_cfg = self._out_dtype

        gen, max_tm, vmem_phys, n_cores = _gen_params()
        sublane = _sublane_pack(compute_dtype)

        weight_bytes = (_WEIGHT_BUFFERS * c_item
                        * sum(l["k_pad"] * l["n_pad"] for l in layers))
        bias_bytes = _WEIGHT_BUFFERS * 4 * sum(l["n_pad"] for l in layers)
        max_np = max(l["n_pad"] for l in layers)

        def vmem_need(tm, out_itemsize):
            x_tile = 2 * tm * k0_pad * c_item            # double-buffered input tile
            o_tile = 2 * tm * n_out_pad * out_itemsize   # double-buffered output tile
            acc = 2 * tm * max_np * 4                    # live f32 h + acc per layer
            return weight_bytes + bias_bytes + x_tile + o_tile + acc

        def fwd(x, *wb):
            m = x.shape[0]
            assert x.shape[1] == k0
            out_dtype = out_dtype_cfg if out_dtype_cfg is not None else x.dtype
            out_itemsize = jnp.dtype(out_dtype).itemsize

            # --- batch tile selection (generation aware) ---
            tm = min(_round_up(m, sublane), max_tm)
            if n_cores > 1:
                # v7x: give both TensorCores at least one batch tile when possible.
                m_sub = _round_up(m, sublane)
                if m_sub // tm <= 1 and m_sub >= 2 * sublane:
                    tm = _round_up(-(-m_sub // 2), sublane)
            # Shrink the tile until the VMEM budget (with 25% headroom) fits.
            while (tm > sublane
                   and int(vmem_need(tm, out_itemsize) * 1.25) > int(vmem_phys * 0.9)):
                tm = max(sublane, _round_up(tm // 2, sublane))
            # TODO(synk): if the padded weight chain alone exceeds the VMEM budget
            # (very wide layers on v7x's 64 MiB), split the chain into multiple
            # pallas_calls / K-tile the widest layer with pltpu.emit_pipeline.
            vmem_limit = int(min(vmem_phys * 0.9,
                                 max(vmem_need(tm, out_itemsize) * 1.25, 32 * _MIB)))

            m_pad = _round_up(m, tm)

            # --- input staging: skip the HBM pad pass when already aligned ---
            x_c = x if x.dtype == compute_dtype else x.astype(compute_dtype)
            if m_pad == m and k0 == k0_pad:
                xp = x_c
            else:
                xp = jnp.zeros((m_pad, k0_pad), compute_dtype)
                xp = xp.at[:m, :k0].set(x_c)

            in_specs = [pl.BlockSpec((tm, k0_pad), lambda i: (i, 0))]
            for l in layers:
                kp, np_ = l["k_pad"], l["n_pad"]
                in_specs.append(_resident_spec((kp, np_)))   # weight: constant block
                in_specs.append(_resident_spec((1, np_)))    # bias:   constant block

            kernel = functools.partial(
                _fused_ffc_kernel, num_layers=upto,
                tanh_flags=tanh_flags, compute_dtype=compute_dtype)

            flops = 2 * m_pad * sum(l["k_pad"] * l["n_pad"] for l in layers)
            transcendentals = m_pad * sum(l["n_pad"] for l in layers if l["tanh"])
            bytes_accessed = (
                m_pad * k0_pad * c_item
                + sum(a.size * a.dtype.itemsize for a in wb)
                + m_pad * n_out_pad * out_itemsize)

            out = pl.pallas_call(
                kernel,
                # NOTE: output last dim kept at n_out_pad (>=128 multiple) on
                # purpose -> unmasked lane-dense stores; do not shrink to n_out.
                out_shape=jax.ShapeDtypeStruct((m_pad, n_out_pad), out_dtype),
                grid_spec=pltpu.PrefetchScalarGridSpec(
                    num_scalar_prefetch=0,
                    grid=(m_pad // tm,),
                    in_specs=in_specs,
                    out_specs=pl.BlockSpec((tm, n_out_pad), lambda i: (i, 0)),
                ),
                compiler_params=pltpu.CompilerParams(
                    dimension_semantics=("parallel",),
                    vmem_limit_bytes=vmem_limit),
                cost_estimate=pl.CostEstimate(
                    flops=flops, transcendentals=transcendentals,
                    bytes_accessed=bytes_accessed),
            )(xp, *wb)

            if m_pad == m and n_out == n_out_pad:
                return out
            return out[:m, :n_out]

        jitted = jax.jit(fwd)
        self._fwd_cache[upto] = jitted
        return jitted


def _torch_linear_init(key, out_features, in_features, dtype=jnp.float32):
    """Deterministic PyTorch-style Linear init: U(-1/sqrt(in), 1/sqrt(in))."""
    kw, kb = jax.random.split(key)
    bound = 1.0 / jnp.sqrt(jnp.float32(in_features))
    w = jax.random.uniform(kw, (out_features, in_features), dtype,
                           minval=-bound, maxval=bound)
    b = jax.random.uniform(kb, (out_features,), dtype,
                           minval=-bound, maxval=bound)
    return w, b


if __name__ == "__main__":
    key = jax.random.PRNGKey(0)
    k_x, k_l0, k_l1 = jax.random.split(key, 3)

    batch, in_dim, hidden, out_dim = 8, 32, 64, 16
    x = jax.random.normal(k_x, (batch, in_dim), jnp.float32)

    w0, b0 = _torch_linear_init(k_l0, hidden, in_dim)
    w1, b1 = _torch_linear_init(k_l1, out_dim, hidden)

    # f32 model (exact path).
    model = BaseFFC(compute_dtype=jnp.float32)
    model.add_layer(w0, b0, apply_tanh=True)    # layer0: Linear(32->64) + Tanh
    model.add_layer(w1, b1, apply_tanh=False)   # layer1: Linear(64->16)

    y = model(x)                                # full forward (upto=None)
    h0 = model(x, upto=0)                       # partial forward
    y_boundary = model(x, upto=model._layer_counter)   # boundary case (clamped)
    jax.block_until_ready(y)
    jax.block_until_ready(h0)
    jax.block_until_ready(y_boundary)

    # Pure-JAX reference check.
    h0_ref = jnp.tanh(x @ w0.T + b0)
    y_ref = h0_ref @ w1.T + b1
    assert y.shape == (batch, out_dim)
    assert h0.shape == (batch, hidden)
    assert jnp.allclose(h0, h0_ref, atol=1e-5, rtol=1e-5)
    assert jnp.allclose(y, y_ref, atol=1e-5, rtol=1e-5)
    assert jnp.allclose(y_boundary, y_ref, atol=1e-5, rtol=1e-5)

    # bf16-operand / f32-accumulate model (fast MXU path on all generations),
    # bf16 output to halve the writeback DMA.
    model_bf16 = BaseFFC(compute_dtype=jnp.bfloat16, out_dtype=jnp.bfloat16)
    model_bf16.add_layer(w0, b0, apply_tanh=True)
    model_bf16.add_layer(w1, b1, apply_tanh=False)
    y_bf16 = model_bf16(x)
    jax.block_until_ready(y_bf16)
    assert y_bf16.dtype == jnp.bfloat16
    assert jnp.allclose(y_bf16.astype(jnp.float32), y_ref, atol=5e-2, rtol=5e-2)

    print("KERNEL_OK")
</pallas_src>

<mosaic_0001>
module attributes {stable_mosaic.version = 11 : i64} {
  func.func @_fused_ffc_kernel(%arg0: i32, %arg1: memref<8x128xf32, #tpu.memory_space<vmem>>, %arg2: memref<128x128xf32, #tpu.memory_space<vmem>>, %arg3: memref<1x128xf32, #tpu.memory_space<vmem>>, %arg4: memref<128x128xf32, #tpu.memory_space<vmem>>, %arg5: memref<1x128xf32, #tpu.memory_space<vmem>>, %arg6: memref<8x128xf32, #tpu.memory_space<vmem>>) attributes {dimension_semantics = [#tpu.dimension_semantics<parallel>], iteration_bounds = array<i64: 1>, scalar_prefetch = 0 : i64, scratch_operands = 0 : i64, tpu.core_type = #tpu.core_type<tc>, window_params = [{transform_indices = @transform_0, window_bounds = array<i64: 8, 128>}, {pipeline_mode = #tpu.pipeline_mode<synchronous>, transform_indices = @transform_1, window_bounds = array<i64: 128, 128>}, {pipeline_mode = #tpu.pipeline_mode<synchronous>, transform_indices = @transform_2, window_bounds = array<i64: 1, 128>}, {pipeline_mode = #tpu.pipeline_mode<synchronous>, transform_indices = @transform_3, window_bounds = array<i64: 128, 128>}, {pipeline_mode = #tpu.pipeline_mode<synchronous>, transform_indices = @transform_4, window_bounds = array<i64: 1, 128>}, {transform_indices = @transform_5, window_bounds = array<i64: 8, 128>}]} {
    %c0 = arith.constant 0 : index
    %c0_0 = arith.constant 0 : index
    %0 = vector.load %arg1[%c0, %c0_0] : memref<8x128xf32, #tpu.memory_space<vmem>>, vector<8x128xf32>
    %c0_1 = arith.constant 0 : index
    %c0_2 = arith.constant 0 : index
    %1 = vector.load %arg2[%c0_1, %c0_2] : memref<128x128xf32, #tpu.memory_space<vmem>>, vector<128x128xf32>
    %c0_3 = arith.constant 0 : index
    %c0_4 = arith.constant 0 : index
    %2 = vector.load %arg3[%c0_3, %c0_4] : memref<1x128xf32, #tpu.memory_space<vmem>>, vector<1x128xf32>
    %cst = arith.constant dense<0.000000e+00> : vector<8x128xf32>
    %3 = tpu.matmul %0, %1, %cst {dimension_numbers = #tpu.dot_dimension_numbers<[1], [0], [0], [1], [0, 0, 1, 1], [], []>} : vector<8x128xf32>, vector<128x128xf32>, vector<8x128xf32> -> vector<8x128xf32>
    %4 = vector.broadcast %2 : vector<1x128xf32> to vector<8x128xf32>
    %5 = arith.addf %3, %4 : vector<8x128xf32>
    %6 = math.tanh %5 : vector<8x128xf32>
    %c0_5 = arith.constant 0 : index
    %c0_6 = arith.constant 0 : index
    %7 = vector.load %arg4[%c0_5, %c0_6] : memref<128x128xf32, #tpu.memory_space<vmem>>, vector<128x128xf32>
    %c0_7 = arith.constant 0 : index
    %c0_8 = arith.constant 0 : index
    %8 = vector.load %arg5[%c0_7, %c0_8] : memref<1x128xf32, #tpu.memory_space<vmem>>, vector<1x128xf32>
    %cst_9 = arith.constant dense<0.000000e+00> : vector<8x128xf32>
    %9 = tpu.matmul %6, %7, %cst_9 {dimension_numbers = #tpu.dot_dimension_numbers<[1], [0], [0], [1], [0, 0, 1, 1], [], []>} : vector<8x128xf32>, vector<128x128xf32>, vector<8x128xf32> -> vector<8x128xf32>
    %10 = vector.broadcast %8 : vector<1x128xf32> to vector<8x128xf32>
    %11 = arith.addf %9, %10 : vector<8x128xf32>
    %c0_10 = arith.constant 0 : index
    %c0_11 = arith.constant 0 : index
    %12 = vector.load %arg6[%c0_10, %c0_11] : memref<8x128xf32, #tpu.memory_space<vmem>>, vector<8x128xf32>
    tpu.vector_store %arg6[%c0_10, %c0_11], %11 {strides = array<i32>} : memref<8x128xf32, #tpu.memory_space<vmem>>, vector<8x128xf32>,
    return
  }
  func.func @transform_0(%arg0: i32) -> (i32, i32) {
    %c0_i32 = arith.constant 0 : i32
    %c0_i32_0 = arith.constant 0 : i32
    return %arg0, %c0_i32 : i32, i32
  }
  func.func @transform_1(%arg0: i32) -> (i32, i32) {
    %c0_i32 = arith.constant 0 : i32
    %c0_i32_0 = arith.constant 0 : i32
    %c0_i32_1 = arith.constant 0 : i32
    return %c0_i32, %c0_i32_0 : i32, i32
  }
  func.func @transform_2(%arg0: i32) -> (i32, i32) {
    %c0_i32 = arith.constant 0 : i32
    %c0_i32_0 = arith.constant 0 : i32
    %c0_i32_1 = arith.constant 0 : i32
    return %c0_i32, %c0_i32_0 : i32, i32
  }
  func.func @transform_3(%arg0: i32) -> (i32, i32) {
    %c0_i32 = arith.constant 0 : i32
    %c0_i32_0 = arith.constant 0 : i32
    %c0_i32_1 = arith.constant 0 : i32
    return %c0_i32, %c0_i32_0 : i32, i32
  }
  func.func @transform_4(%arg0: i32) -> (i32, i32) {
    %c0_i32 = arith.constant 0 : i32
    %c0_i32_0 = arith.constant 0 : i32
    %c0_i32_1 = arith.constant 0 : i32
    return %c0_i32, %c0_i32_0 : i32, i32
  }
  func.func @transform_5(%arg0: i32) -> (i32, i32) {
    %c0_i32 = arith.constant 0 : i32
    %c0_i32_0 = arith.constant 0 : i32
    return %arg0, %c0_i32 : i32, i32
  }
}

</mosaic_0001>

<bundles_post_ra>
// kernel: fwd.1
= control target key start
LH: loop header
LB: loop body
LE: loop exit
PB: predicated region body
PF: predicated region fallthrough
CT: control target
= control target key end

     0   :  { %10 = vsyncpa [#allocation3], 0  ;;  %s589_s0 = inlined_call_operand.vmem [shape: f32[8,128], index: 0, kind: input, shape index: {}]   ;;  %s590_s1 = inlined_call_operand.hbm [shape: f32[128,128], index: 1, kind: input, shape index: {}]   ;;  %s591_s2 = inlined_call_operand.vmem [shape: f32[1,128], index: 2, kind: input, shape index: {}]   ;;  %s592_s3 = inlined_call_operand.hbm [shape: f32[128,128], index: 3, kind: input, shape index: {}]   ;;  %s593_s4 = inlined_call_operand.vmem [shape: f32[1,128], index: 4, kind: input, shape index: {}]   ;;  %s594_s5 = inlined_call_operand.hbm [shape: f32[8,128], index: 5, kind: output, shape index: {}]  }
   0x1   :  { %11 = vsyncpa [#allocation6], 0 }
   0x2   :  { %12 = vsyncpa [#allocation4], 0  ;;  %s490_s18 = smov [#allocation2]   ;;  %s418_s22 = scalar_lea.hbm %s590_s1, 2048 }
   0x3   :  { %s20_s19 = sshll.u32 %s490_s18, 4  ;;  %p419_p0 = scmp.ne.s32.totalorder %s590_s1, %s418_s22  ;;  %s21_s19 = int_to_ptr.vmem [resolvable:$true] %s20_s19 }
   0x4   :  { %p422_p1 = scmp.lt.u32.totalorder %s418_s22, %s590_s1 }
   0x6   :  { %p424_p2 = pnand %p422_p1, %p419_p0 }
   0x8   :  { %427 = shalt.err (!%p424_p2)
}
   0x9   :  { %s428_s27 = scalar_lea.vmem %s21_s19, 2048  ;;  %p433_p4 = scmp.lt.s32.totalorder %s21_s19, %s21_s19 }
   0xa   :  { %p429_p3 = scmp.ne.s32.totalorder %s21_s19, %s428_s27  ;;  %p434_p5 = scmp.lt.s32.totalorder %s428_s27, %s428_s27 }
   0xc   :  { %p435_p6 = por %p434_p5, %p433_p4 }
   0xe   :  { %p436_p7 = pnand %p435_p6, %p429_p3 }
  0x10   :  { %439 = shalt.err (!%p436_p7)
}
  0x11   :  { %s491_s28 = smov 128   ;;  %s492_s29 = smov 8  }
  0x12   :  { %26 = dma.hbm_to_vmem [thread:$0]  %s590_s1, 2048, %s21_s19, [#allocation3], %s491_s28, %s491_s28, %s492_s29  }
  0x13   :  { %s493_s7 = smov [#allocation5]   ;;  %s440_s11 = scalar_lea.hbm %s592_s3, 2048 }
  0x14   :  { %s34_s8 = sshll.u32 %s493_s7, 4  ;;  %p441_p8 = scmp.ne.s32.totalorder %s592_s3, %s440_s11  ;;  %s35_s8 = int_to_ptr.vmem [resolvable:$true] %s34_s8 }
  0x15   :  { %p444_p9 = scmp.lt.u32.totalorder %s440_s11, %s592_s3 }
  0x17   :  { %p446_p10 = pnand %p444_p9, %p441_p8 }
  0x19   :  { %449 = shalt.err (!%p446_p10)
}
  0x1a   :  { %s450_s16 = scalar_lea.vmem %s35_s8, 2048  ;;  %p455_p12 = scmp.lt.s32.totalorder %s35_s8, %s35_s8 }
  0x1b   :  { %p451_p11 = scmp.ne.s32.totalorder %s35_s8, %s450_s16  ;;  %p456_p13 = scmp.lt.s32.totalorder %s450_s16, %s450_s16 }
  0x1d   :  { %p457_p0 = por %p456_p13, %p455_p12 }
  0x1f   :  { %p458_p1 = pnand %p457_p0, %p451_p11 }
  0x21   :  { %461 = shalt.err (!%p458_p1)
}
  0x22   :  { %40 = dma.hbm_to_vmem [thread:$0]  %s592_s3, 2048, %s35_s8, [#allocation6], %s491_s28, %s491_s28, %s492_s29  }
  0x23   :  { %484 = dma.done.wait [#allocation3], 2048  }
  0x24   :  { %485 = vsyncadd [#allocation3], 4294965248 }
  0x25   :  { %486 = dma.done.wait [#allocation6], 2048  }
  0x26   :  { %487 = vsyncadd [#allocation6], 4294965248  ;;  %v494_v0 = vmov 0.0|0.0   ;;  %vm495_vm0 = vmmov 0   ;;  %v496_v1 = vmov 0.0   ;;  %v50_v2 = vld [vmem:[#allocation2] sm:$0xff] }
  0x27   :  { %360 = vmatprep.subr.bf16.mxu0 %v494_v0  ;;  %322 = vmatprep.mubr.msk.f32.mxu0 %vm495_vm0, %v496_v1  ;;  %v51_v3 = vld [vmem:[#allocation2 + $0x8] sm:$0xff]  ;;  %v52_v4 = vld [vmem:[#allocation2 + $0x10] sm:$0xff]  ;;  %v53_v6 = vld [vmem:[#allocation2 + $0x18] sm:$0xff]  ;;  %s497_s22 = smov [#allocation7]  }
  0x28   :  { %384 = vmatprep.subr.bf16.mxu1 %v494_v0  ;;  %357 = vmatprep.mubr.msk.f32.mxu1 %vm495_vm0, %v496_v1  ;;  %v361_v5 = vpack.c.bf16 %v51_v3, %v50_v2  ;;  %v364_v7 = vpack.c.bf16 %v53_v6, %v52_v4  ;;  %v54_v8 = vld [vmem:[#allocation2 + $0x20] sm:$0xff]  ;;  %v55_v9 = vld [vmem:[#allocation2 + $0x28] sm:$0xff]  ;;  %v146_v12 = vld [vmem:[#allocation5 + $0x10] sm:$0xff]  ;;  %s244_s23 = sshll.u32 %s497_s22, 4  ;;  %s245_s23 = int_to_ptr.vmem [resolvable:$true] %s244_s23 }
  0x29   :  { %v144_v10 = vld [vmem:[#allocation5] sm:$0xff]  ;;  %v145_v11 = vld [vmem:[#allocation5 + $0x8] sm:$0xff]  ;;  %v147_v13 = vld [vmem:[#allocation5 + $0x18] sm:$0xff]  ;;  %v367_v14 = vpack.c.bf16 %v55_v9, %v54_v8  ;;  %s462_s24 = scalar_lea.vmem %s245_s23, 128  ;;  %p467_p3 = scmp.lt.s32.totalorder %s245_s23, %s245_s23 }
  0x2a   :  { %362 = vmatpush3.bf16.msra.mxu0 %v361_v5  ;;  %v385_v15 = vpack.c.bf16 %v145_v11, %v144_v10  ;;  %v56_v16 = vld [vmem:[#allocation2 + $0x30] sm:$0xff]  ;;  %v57_v17 = vld [vmem:[#allocation2 + $0x38] sm:$0xff]  ;;  %v388_v18 = vpack.c.bf16 %v147_v13, %v146_v12  ;;  %v148_v19 = vld [vmem:[#allocation5 + $0x20] sm:$0xff]  ;;  %p463_p2 = scmp.ne.s32.totalorder %s245_s23, %s462_s24  ;;  %p468_p4 = scmp.lt.s32.totalorder %s462_s24, %s462_s24 }
  0x2b   :  { %363 = vmatprep.subr.bf16.mxu0 %v494_v0  ;;  %v149_v20 = vld [vmem:[#allocation5 + $0x28] sm:$0xff]  ;;  %v370_v21 = vpack.c.bf16 %v57_v17, %v56_v16  ;;  %v58_v22 = vld [vmem:[#allocation2 + $0x40] sm:$0xff]  ;;  %v150_v25 = vld [vmem:[#allocation5 + $0x30] sm:$0xff] }
  0x2c   :  { %386 = vmatpush3.bf16.msra.mxu1 %v385_v15  ;;  %v59_v23 = vld [vmem:[#allocation2 + $0x48] sm:$0xff]  ;;  %v391_v24 = vpack.c.bf16 %v149_v20, %v148_v19  ;;  %v151_v26 = vld [vmem:[#allocation5 + $0x38] sm:$0xff]  ;;  %v60_v28 = vld [vmem:[#allocation2 + $0x50] sm:$0xff]  ;;  %p469_p5 = por %p468_p4, %p467_p3 }
  0x2d   :  { %387 = vmatprep.subr.bf16.mxu1 %v494_v0  ;;  %v373_v27 = vpack.c.bf16 %v59_v23, %v58_v22  ;;  %v61_v29 = vld [vmem:[#allocation2 + $0x58] sm:$0xff]  ;;  %v394_v30 = vpack.c.bf16 %v151_v26, %v150_v25  ;;  %v152_v31 = vld [vmem:[#allocation5 + $0x40] sm:$0xff]  ;;  %v153_v32 = vld [vmem:[#allocation5 + $0x48] sm:$0xff] }
  0x2e   :  { %365 = vmatpush3.bf16.msra.mxu0 %v364_v7  ;;  %v376_v33 = vpack.c.bf16 %v61_v29, %v60_v28  ;;  %v62_v34 = vld [vmem:[#allocation2 + $0x60] sm:$0xff]  ;;  %v63_v35 = vld [vmem:[#allocation2 + $0x68] sm:$0xff]  ;;  %v397_v36 = vpack.c.bf16 %v153_v32, %v152_v31  ;;  %v64_v38 = vld [vmem:[#allocation2 + $0x70] sm:$0xff]  ;;  %p470_p6 = pnand %p469_p5, %p463_p2 }
  0x2f   :  { %366 = vmatprep.subr.bf16.mxu0 %v494_v0  ;;  %v379_v37 = vpack.c.bf16 %v63_v35, %v62_v34  ;;  %v65_v39 = vld [vmem:[#allocation2 + $0x78] sm:$0xff]  ;;  %v49_v41 = vld [vmem:[%s589_s0] sm:$0xff]  ;;  %v154_v42 = vld [vmem:[#allocation5 + $0x50] sm:$0xff] }
  0x30   :  { %389 = vmatpush3.bf16.msra.mxu1 %v388_v18  ;;  %v382_v40 = vpack.c.bf16 %v65_v39, %v64_v38  ;;  %v155_v43 = vld [vmem:[#allocation5 + $0x58] sm:$0xff]  ;;  %v156_v45 = vld [vmem:[#allocation5 + $0x60] sm:$0xff]  ;;  %v157_v46 = vld [vmem:[#allocation5 + $0x68] sm:$0xff] }
  0x31   :  { %390 = vmatprep.subr.bf16.mxu1 %v494_v0  ;;  %v400_v44 = vpack.c.bf16 %v155_v43, %v154_v42  ;;  %v403_v47 = vpack.c.bf16 %v157_v46, %v156_v45  ;;  %v158_v48 = vld [vmem:[#allocation5 + $0x70] sm:$0xff]  ;;  %v159_v49 = vld [vmem:[#allocation5 + $0x78] sm:$0xff]  ;;  %v254_v51 = vld [vmem:[%s591_s2] ss:$0 sm:$0xff] }
  0x32   :  { %368 = vmatpush3.bf16.msra.mxu0 %v367_v14  ;;  %v406_v50 = vpack.c.bf16 %v159_v49, %v158_v48  ;;  %v255_v56 = vld [vmem:[%s593_s4] ss:$0 sm:$0xff] }
  0x33   :  { %369 = vmatprep.subr.bf16.mxu0 %v494_v0 }
  0x34   :  { %392 = vmatpush3.bf16.msra.mxu1 %v391_v24 }
  0x35   :  { %393 = vmatprep.subr.bf16.mxu1 %v494_v0 }
  0x36   :  { %371 = vmatpush3.bf16.msra.mxu0 %v370_v21 }
  0x37   :  { %372 = vmatprep.subr.bf16.mxu0 %v494_v0 }
  0x38   :  { %395 = vmatpush3.bf16.msra.mxu1 %v394_v30 }
  0x39   :  { %396 = vmatprep.subr.bf16.mxu1 %v494_v0 }
  0x3a   :  { %374 = vmatpush3.bf16.msra.mxu0 %v373_v27 }
  0x3b   :  { %375 = vmatprep.subr.bf16.mxu0 %v494_v0 }
  0x3c   :  { %398 = vmatpush3.bf16.msra.mxu1 %v397_v36 }
  0x3d   :  { %399 = vmatprep.subr.bf16.mxu1 %v494_v0 }
  0x3e   :  { %377 = vmatpush3.bf16.msra.mxu0 %v376_v33 }
  0x3f   :  { %378 = vmatprep.subr.bf16.mxu0 %v494_v0 }
  0x40   :  { %401 = vmatpush3.bf16.msra.mxu1 %v400_v44 }
  0x41   :  { %402 = vmatprep.subr.bf16.mxu1 %v494_v0 }
  0x42   :  { %380 = vmatpush3.bf16.msra.mxu0 %v379_v37 }
  0x43   :  { %381 = vmatprep.subr.bf16.mxu0 %v494_v0 }
  0x44   :  { %404 = vmatpush3.bf16.msra.mxu1 %v403_v47 }
  0x45   :  { %405 = vmatprep.subr.bf16.mxu1 %v494_v0 }
  0x46   :  { %383 = vmatpush3.bf16.msra.mxu0 %v382_v40 }
  0x48   :  { %407 = vmatpush3.bf16.msra.mxu1 %v406_v50 }
  0x49   :  { %323 = vmatmul.mubr.f32.vlgmr.msra.gmra.mrb[0].mxu0 %v49_v41 }
 0x11c   :  { %v139_v52 = vpop.f32.mrb[0].mxu0 }
 0x11d   :  { %v140_v53 = vadd.f32 %v254_v51, %v139_v52  ;;  %v324_v54 = vpop.f32.mrb[1].mxu0 }
 0x11f   :  { %416 = vtanh.f32 %v140_v53 }
 0x129   :  { %v417_v55 = vpop.eup %416 }
 0x12a   :  { %358 = vmatmul.mubr.f32.vlgmr.msra.gmra.mrb[0].mxu1 %v417_v55 }
 0x1fd   :  { %v233_v57 = vpop.f32.mrb[0].mxu1 }
 0x1fe   :  { %v234_v58 = vadd.f32 %v255_v56, %v233_v57  ;;  %v359_v59 = vpop.f32.mrb[1].mxu1 }
 0x200   :  { %237 = vst [vmem:[#allocation7] sm:$0xff] %v234_v58 }
 0x201   :  { %473 = shalt.err (!%p470_p6)
}
 0x202   :  { %s474_s26 = scalar_lea.hbm %s594_s5, 128 }
 0x203   :  { %p475_p7 = scmp.ne.s32.totalorder %s594_s5, %s474_s26  ;;  %p478_p8 = scmp.lt.u32.totalorder %s474_s26, %s594_s5 }
 0x205   :  { %p480_p9 = pnand %p478_p8, %p475_p7 }
 0x207   :  { %483 = shalt.err (!%p480_p9)
}
 0x208   :  { %247 = dma.vmem_to_hbm [thread:$0]  %s245_s23, 128, %s594_s5, [#allocation4]  }
 0x209   :  { %488 = dma.done.wait [#allocation4], 128  }
 0x20a   :  { %489 = vsyncadd [#allocation4], 4294967168 }
 0x20b   :  { %251 = vsyncpa [#allocation3], 1 }
 0x20c   :  { %252 = vsyncpa [#allocation6], 1 }
 0x20d   :  { %253 = vsyncpa [#allocation4], 1 }

</bundles_post_ra>
